<compile_context>
chip_gen: v7x
topology: tpu7x:2x2x1
jax: 0.10.0
libtpu: 0.0.40
codegen_flags: <defaults>
</compile_context>

<pallas_src>
import jax
import jax.numpy as jnp
from jax.experimental import pallas as pl
from jax.experimental.pallas import tpu as pltpu


def _ode_mlp_kernel(x_ref, w1_ref, b1_ref, w2_ref, b2_ref, o_ref):
    # x_ref : [D_in, BN]   (points on the lane axis)
    # w1_ref: [H, D_in]    b1_ref: [H, 1]
    # w2_ref: [D_out, H]   b2_ref: [D_out, 1]
    # o_ref : [D_out, BN]
    x_t = x_ref[...]
    w1 = w1_ref[...]
    d_in = w1.shape[1]

    # Layer 1: contraction depth D_in is tiny -> unrolled VPU broadcast-FMAs,
    # no MXU round-trip.  acc: [H, BN]
    acc = w1[:, 0:1] * x_t[0:1, :]
    for d in range(1, d_in):
        acc = acc + w1[:, d:d + 1] * x_t[d:d + 1, :]
    h_t = jnp.tanh(acc + b1_ref[...])            # EUP tanh in f32

    # Layer 2: [D_out, H] @ [H, BN] -> lane-dense [D_out, BN] on the MXU.
    y_t = jnp.dot(w2_ref[...], h_t, preferred_element_type=jnp.float32)
    y_t = y_t + b2_ref[...]
    o_ref[...] = y_t.astype(o_ref.dtype)


def ode_wrapper_forward(x, w1, b1, w2, b2, *, block_n=2048):
    """ODEWrapper.forward: model(None, x) for the synthetic tanh-MLP model.

    x : [N, D_in] float32
    w1: [H, D_in] (PyTorch Linear layout), b1: [H]
    w2: [D_out, H],                        b2: [D_out]
    block_n: lane-tile size used only when N exceeds it (multiple of 128).
    """
    n, d_in = x.shape
    h_dim = w1.shape[0]
    d_out = w2.shape[0]
    assert block_n % 128 == 0

    # Lane-dense layout: points on the lane (last) axis, padded to 128.
    n_pad = max(128, ((n + 127) // 128) * 128)
    if n_pad > block_n:
        n_pad = ((n_pad + block_n - 1) // block_n) * block_n

    x_t = x.T
    if n_pad != n:
        x_t = jnp.pad(x_t, ((0, 0), (0, n_pad - n)))
    b1_2d = b1.reshape(h_dim, 1)
    b2_2d = b2.reshape(d_out, 1)

    if n_pad <= block_n:
        # Single resident block: no grid machinery, no per-step overhead.
        vmem = pl.BlockSpec(memory_space=pltpu.MemorySpace.VMEM)
        y_t = pl.pallas_call(
            _ode_mlp_kernel,
            out_shape=jax.ShapeDtypeStruct((d_out, n_pad), x.dtype),
            in_specs=[vmem] * 5,
            out_specs=vmem,
        )(x_t, w1, b1_2d, w2, b2_2d)
    else:
        # Tile only N; weights use constant index maps so they stay resident.
        grid = (n_pad // block_n,)
        y_t = pl.pallas_call(
            _ode_mlp_kernel,
            out_shape=jax.ShapeDtypeStruct((d_out, n_pad), x.dtype),
            grid=grid,
            in_specs=[
                pl.BlockSpec((d_in, block_n), lambda i: (0, i)),
                pl.BlockSpec((h_dim, d_in), lambda i: (0, 0)),
                pl.BlockSpec((h_dim, 1), lambda i: (0, 0)),
                pl.BlockSpec((d_out, h_dim), lambda i: (0, 0)),
                pl.BlockSpec((d_out, 1), lambda i: (0, 0)),
            ],
            out_specs=pl.BlockSpec((d_out, block_n), lambda i: (0, i)),
            compiler_params=pltpu.CompilerParams(
                dimension_semantics=("parallel",)
            ),
        )(x_t, w1, b1_2d, w2, b2_2d)

    # Back to the [N, D_out] the wrapper's caller expects (cheap XLA glue).
    return y_t[:, :n].T


if __name__ == "__main__":
    # Vector-field sample: 16x16 grid of 2-D states -> N=256 points, D=2.
    N, D_IN, H, D_OUT = 256, 2, 32, 2

    key = jax.random.PRNGKey(0)
    k_x, k_w1, k_b1, k_w2, k_b2 = jax.random.split(key, 5)

    x = jax.random.normal(k_x, (N, D_IN), dtype=jnp.float32)
    # PyTorch Linear layout: weight is [out, in].
    w1 = jax.random.normal(k_w1, (H, D_IN), dtype=jnp.float32) * 0.1
    b1 = jax.random.normal(k_b1, (H,), dtype=jnp.float32) * 0.1
    w2 = jax.random.normal(k_w2, (D_OUT, H), dtype=jnp.float32) * 0.1
    b2 = jax.random.normal(k_b2, (D_OUT,), dtype=jnp.float32) * 0.1

    # Pure-JAX reference of the same forward (ODEWrapper drops t=None).
    y_ref = jnp.tanh(x @ w1.T + b1) @ w2.T + b2

    # Path 1: small-N, no-grid resident kernel.
    y = ode_wrapper_forward(x, w1, b1, w2, b2)
    jax.block_until_ready(y)
    assert jnp.allclose(y, y_ref, atol=1e-5, rtol=1e-5)

    # Path 2: exercise the N-tiled (parallel grid) variant as well.
    y_tiled = ode_wrapper_forward(x, w1, b1, w2, b2, block_n=128)
    jax.block_until_ready(y_tiled)
    assert jnp.allclose(y_tiled, y_ref, atol=1e-5, rtol=1e-5)

    print("KERNEL_OK")
</pallas_src>

<mosaic_0001>
module attributes {stable_mosaic.version = 11 : i64} {
  func.func @_ode_mlp_kernel(%arg0: memref<2x256xf32, #tpu.memory_space<vmem>>, %arg1: memref<32x2xf32, #tpu.memory_space<vmem>>, %arg2: memref<32x1xf32, #tpu.memory_space<vmem>>, %arg3: memref<2x32xf32, #tpu.memory_space<vmem>>, %arg4: memref<2x1xf32, #tpu.memory_space<vmem>>, %arg5: memref<2x256xf32, #tpu.memory_space<vmem>>) attributes {dimension_semantics = [], scalar_prefetch = 0 : i64, scratch_operands = 0 : i64, tpu.core_type = #tpu.core_type<tc>} {
    %c0 = arith.constant 0 : index
    %c0_0 = arith.constant 0 : index
    %0 = vector.load %arg0[%c0, %c0_0] : memref<2x256xf32, #tpu.memory_space<vmem>>, vector<2x256xf32>
    %c0_1 = arith.constant 0 : index
    %c0_2 = arith.constant 0 : index
    %1 = vector.load %arg1[%c0_1, %c0_2] : memref<32x2xf32, #tpu.memory_space<vmem>>, vector<32x2xf32>
    %2 = vector.extract_strided_slice %1 {offsets = [0, 0], sizes = [32, 1], strides = [1, 1]} : vector<32x2xf32> to vector<32x1xf32>
    %3 = vector.extract_strided_slice %0 {offsets = [0, 0], sizes = [1, 256], strides = [1, 1]} : vector<2x256xf32> to vector<1x256xf32>
    %4 = vector.broadcast %2 : vector<32x1xf32> to vector<32x256xf32>
    %5 = vector.broadcast %3 : vector<1x256xf32> to vector<32x256xf32>
    %6 = arith.mulf %4, %5 : vector<32x256xf32>
    %7 = vector.extract_strided_slice %1 {offsets = [0, 1], sizes = [32, 1], strides = [1, 1]} : vector<32x2xf32> to vector<32x1xf32>
    %8 = vector.extract_strided_slice %0 {offsets = [1, 0], sizes = [1, 256], strides = [1, 1]} : vector<2x256xf32> to vector<1x256xf32>
    %9 = vector.broadcast %7 : vector<32x1xf32> to vector<32x256xf32>
    %10 = vector.broadcast %8 : vector<1x256xf32> to vector<32x256xf32>
    %11 = arith.mulf %9, %10 : vector<32x256xf32>
    %12 = arith.addf %6, %11 : vector<32x256xf32>
    %c0_3 = arith.constant 0 : index
    %c0_4 = arith.constant 0 : index
    %13 = vector.load %arg2[%c0_3, %c0_4] : memref<32x1xf32, #tpu.memory_space<vmem>>, vector<32x1xf32>
    %14 = vector.broadcast %13 : vector<32x1xf32> to vector<32x256xf32>
    %15 = arith.addf %12, %14 : vector<32x256xf32>
    %16 = math.tanh %15 : vector<32x256xf32>
    %c0_5 = arith.constant 0 : index
    %c0_6 = arith.constant 0 : index
    %17 = vector.load %arg3[%c0_5, %c0_6] : memref<2x32xf32, #tpu.memory_space<vmem>>, vector<2x32xf32>
    %cst = arith.constant dense<0.000000e+00> : vector<2x256xf32>
    %18 = tpu.matmul %17, %16, %cst {dimension_numbers = #tpu.dot_dimension_numbers<[1], [0], [0], [1], [0, 0, 1, 1], [], []>} : vector<2x32xf32>, vector<32x256xf32>, vector<2x256xf32> -> vector<2x256xf32>
    %c0_7 = arith.constant 0 : index
    %c0_8 = arith.constant 0 : index
    %19 = vector.load %arg4[%c0_7, %c0_8] : memref<2x1xf32, #tpu.memory_space<vmem>>, vector<2x1xf32>
    %20 = vector.broadcast %19 : vector<2x1xf32> to vector<2x256xf32>
    %21 = arith.addf %18, %20 : vector<2x256xf32>
    %c0_9 = arith.constant 0 : index
    %c0_10 = arith.constant 0 : index
    %22 = vector.load %arg5[%c0_9, %c0_10] : memref<2x256xf32, #tpu.memory_space<vmem>>, vector<2x256xf32>
    tpu.vector_store %arg5[%c0_9, %c0_10], %21 {strides = array<i32>} : memref<2x256xf32, #tpu.memory_space<vmem>>, vector<2x256xf32>,
    return
  }
}

</mosaic_0001>

<bundles_post_ra>
// kernel: tpu_custom_call.1
= control target key start
LH: loop header
LB: loop body
LE: loop exit
PB: predicated region body
PF: predicated region fallthrough
CT: control target
= control target key end

     0   :  { %v331_v2 = vmov 1   ;;  %s410_s0 = inlined_call_operand.vmem [shape: f32[2,256], index: 0, kind: input, shape index: {}]   ;;  %s411_s1 = inlined_call_operand.vmem [shape: f32[32,2], index: 1, kind: input, shape index: {}]   ;;  %s412_s2 = inlined_call_operand.vmem [shape: f32[32,1], index: 2, kind: input, shape index: {}]   ;;  %s413_s3 = inlined_call_operand.vmem [shape: f32[2,32], index: 3, kind: input, shape index: {}]   ;;  %s414_s4 = inlined_call_operand.vmem [shape: f32[2,1], index: 4, kind: input, shape index: {}]   ;;  %s415_s5 = inlined_call_operand.hbm [shape: f32[2,256], index: 5, kind: output, shape index: {}]  }
   0x1   :  { %v24_v0 = vld [vmem:[%s411_s1 + $0x10] sm:$0xff]  ;;  %v22_v1 = vld [vmem:[%s411_s1] sm:$0xff]  ;;  %287 = vset.pattern.permute.xlu0 %v331_v2  ;;  %285 = vset.pattern.permute.xlu1 %v331_v2  ;;  %v23_v3 = vld [vmem:[%s411_s1 + $0x8] sm:$0xff] }
   0x2   :  { %82 = vperm.xlu0 %287, %v24_v0   ;;  %74 = vperm.xlu1 %285, %v22_v1  }
   0x3   :  { %10 = vsyncpa [#allocation3], 0  ;;  %v332_v4 = vmov 0   ;;  %v25_v5 = vld [vmem:[%s411_s1 + $0x18] sm:$0xff]  ;;  %v124_v6 = vld [vmem:[%s412_s2 + $0x8] sm:$0xff]  ;;  %v333_v11 = vmov 0.0   ;;  %v47_v12 = vlaneseq }
   0x4   :  { %v123_v7 = vld [vmem:[%s412_s2] sm:$0xff]  ;;  %v125_v9 = vld [vmem:[%s412_s2 + $0x10] sm:$0xff]  ;;  %v126_v10 = vld [vmem:[%s412_s2 + $0x18] sm:$0xff]  ;;  %238 = vmatprep.mubr.f32.mxu0 %v333_v11  ;;  %vm170_vm0 = vcmask 261120   ;;  %s334_s11 = smov [#allocation2]  }
   0x5   :  { %v164_v8 = vld [vmem:[%s414_s4] sm:$0x3]  ;;  %v48_v13 = vshrl.u32 %v47_v12, 7  ;;  %s263_s12 = sshll.u32 %s334_s11, 4  ;;  %s264_s12 = int_to_ptr.vmem [resolvable:$true] %s263_s12 }
   0x6   :  { %288 = vset.pattern.permute.xlu0 %v332_v4  ;;  %78 = vperm.xlu1 %285, %v23_v3   ;;  %v21_v20 = vld [vmem:[%s410_s0] sm:$0xf]  ;;  %s307_s13 = scalar_lea.vmem %s264_s12, 64  ;;  %p312_p1 = scmp.lt.s32.totalorder %s264_s12, %s264_s12 }
   0x7   :  { %28 = vperm.xlu0 %288, %v22_v1   ;;  %v49_v16 = vsub.s32 0, %v48_v13  ;;  %v53_v17 = vsub.s32 2, %v48_v13  ;;  %v91_v18 = vsub.s32 1, %v48_v13  ;;  %v95_v19 = vsub.s32 3, %v48_v13  ;;  %p308_p0 = scmp.ne.s32.totalorder %s264_s12, %s307_s13  ;;  %p313_p2 = scmp.lt.s32.totalorder %s307_s13, %s307_s13 }
   0x9   :  { %v50_v23 = vrot.slane %v21_v20, %v49_v16  ;;  %v54_v24 = vrot.slane %v21_v20, %v53_v17  ;;  %v92_v25 = vrot.slane %v21_v20, %v91_v18  ;;  %v96_v26 = vrot.slane %v21_v20, %v95_v19  ;;  %v163_v19 = vld [vmem:[%s413_s3] sm:$0x3]  ;;  %p314_p3 = por %p313_p2, %p312_p1 }
   0xa   :  { %286 = vset.pattern.permute.xlu1 %v332_v4 }
   0xb   :  { %33 = vperm.xlu0 %288, %v23_v3   ;;  %43 = vperm.xlu1 %286, %v25_v5   ;;  %v60_v27 = vrot.slane %v50_v23, %v49_v16  ;;  %v64_v30 = vrot.slane %v54_v24, %v49_v16  ;;  %v102_v31 = vrot.slane %v92_v25, %v91_v18  ;;  %p315_p4 = pnand %p314_p3, %p308_p0 }
   0xc   :  { %v106_v32 = vrot.slane %v96_v26, %v91_v18 }
   0xf   :  { %38 = vperm.xlu0 %288, %v24_v0   ;;  %289 = vset.pattern.permute.xlu1 %v331_v2 }
  0x10   :  { %86 = vperm.xlu1 %289, %v25_v5  }
  0x13   :  { %134 = vperm.xlu0 %288, %v124_v6  }
  0x14   :  { %290 = vset.pattern.permute.xlu1 %v332_v4 }
  0x15   :  { %129 = vperm.xlu1 %290, %v123_v7  }
  0x17   :  { %167 = vperm.xlu0 %288, %v164_v8  }
  0x19   :  { %139 = vperm.xlu1 %290, %v125_v9  }
  0x1d   :  { %144 = vperm.xlu1 %290, %v126_v10  }
  0x81   :  { %v75_v14 = vpop.permute.xlu1 %74  ;;  %v83_v15 = vpop.permute.xlu0 %82 }
  0x82   :  { %v107_v41 = vmul.f32 %v102_v31, %v75_v14  ;;  %v108_v42 = vmul.f32 %v106_v32, %v75_v14  ;;  %v111_v53 = vmul.f32 %v102_v31, %v83_v15  ;;  %v112_v56 = vmul.f32 %v106_v32, %v83_v15 }
  0x85   :  { %v79_v21 = vpop.permute.xlu1 %78 }
  0x86   :  { %v29_v22 = vpop.permute.xlu0 %28  ;;  %v109_v37 = vmul.f32 %v102_v31, %v79_v21  ;;  %v110_v38 = vmul.f32 %v106_v32, %v79_v21 }
  0x87   :  { %v65_v35 = vmul.f32 %v60_v27, %v29_v22  ;;  %v66_v39 = vmul.f32 %v64_v30, %v29_v22 }
  0x89   :  { %v115_v46 = vadd.f32 %v107_v41, %v65_v35  ;;  %v116_v50 = vadd.f32 %v108_v42, %v66_v39 }
  0x8a   :  { %v34_v28 = vpop.permute.xlu0 %33  ;;  %v44_v29 = vpop.permute.xlu1 %43 }
  0x8b   :  { %v67_v33 = vmul.f32 %v60_v27, %v34_v28  ;;  %v68_v34 = vmul.f32 %v64_v30, %v34_v28  ;;  %v71_v62 = vmul.f32 %v60_v27, %v44_v29  ;;  %v72_v63 = vmul.f32 %v64_v30, %v44_v29 }
  0x8d   :  { %v117_v43 = vadd.f32 %v109_v37, %v67_v33  ;;  %v118_v44 = vadd.f32 %v110_v38, %v68_v34 }
  0x8e   :  { %v39_v36 = vpop.permute.xlu0 %38 }
  0x8f   :  { %v87_v40 = vpop.permute.xlu1 %86  ;;  %v69_v47 = vmul.f32 %v60_v27, %v39_v36  ;;  %v70_v51 = vmul.f32 %v64_v30, %v39_v36 }
  0x90   :  { %v113_v57 = vmul.f32 %v102_v31, %v87_v40  ;;  %v114_v58 = vmul.f32 %v106_v32, %v87_v40 }
  0x91   :  { %v119_v59 = vadd.f32 %v111_v53, %v69_v47  ;;  %v120_v61 = vadd.f32 %v112_v56, %v70_v51 }
  0x92   :  { %v135_v45 = vpop.permute.xlu0 %134  ;;  %v121_v2 = vadd.f32 %v113_v57, %v71_v62  ;;  %v122_v3 = vadd.f32 %v114_v58, %v72_v63 }
  0x93   :  { %v149_v48 = vadd.f32 %v135_v45, %v117_v43  ;;  %v150_v49 = vadd.f32 %v135_v45, %v118_v44 }
  0x94   :  { %v130_v52 = vpop.permute.xlu1 %129 }
  0x95   :  { %291 = vtanh.f32 %v149_v48  ;;  %v147_v54 = vadd.f32 %v130_v52, %v115_v46  ;;  %v148_v55 = vadd.f32 %v130_v52, %v116_v50 }
  0x96   :  { %293 = vtanh.f32 %v150_v49  ;;  %v168_v20 = vpop.permute.xlu0 %167 }
  0x97   :  { %295 = vtanh.f32 %v147_v54 }
  0x98   :  { %297 = vtanh.f32 %v148_v55  ;;  %v140_v60 = vpop.permute.xlu1 %139 }
  0x99   :  { %v151_v0 = vadd.f32 %v140_v60, %v119_v59  ;;  %v152_v1 = vadd.f32 %v140_v60, %v120_v61 }
  0x9b   :  { %299 = vtanh.f32 %v151_v0 }
  0x9c   :  { %v145_v4 = vpop.permute.xlu1 %144  ;;  %301 = vtanh.f32 %v152_v1 }
  0x9d   :  { %v153_v5 = vadd.f32 %v145_v4, %v121_v2  ;;  %v154_v6 = vadd.f32 %v145_v4, %v122_v3 }
  0x9f   :  { %v292_v7 = vpop.eup %291  ;;  %303 = vtanh.f32 %v153_v5 }
  0xa0   :  { %v294_v8 = vpop.eup %293  ;;  %305 = vtanh.f32 %v154_v6 }
  0xa1   :  { %v296_v9 = vpop.eup %295 }
  0xa2   :  { %v298_v10 = vpop.eup %297  ;;  %v275_v11 = vpack.c.bf16 %v292_v7, %v296_v9 }
  0xa3   :  { %v273_v12 = vpack.c.bf16 %v294_v8, %v298_v10 }
  0xa5   :  { %274 = vmatprep.subr.bf16.mxu0 %v273_v12  ;;  %v300_v13 = vpop.eup %299 }
  0xa6   :  { %276 = vmatpush1.bf16.msra.mxu0 %v275_v11  ;;  %v302_v14 = vpop.eup %301 }
  0xa9   :  { %v304_v15 = vpop.eup %303 }
  0xaa   :  { %v306_v16 = vpop.eup %305  ;;  %v279_v17 = vpack.c.bf16 %v304_v15, %v300_v13 }
  0xab   :  { %v277_v18 = vpack.c.bf16 %v306_v16, %v302_v14 }
  0xad   :  { %278 = vmatprep.subr.bf16.mxu0 %v277_v18 }
  0xae   :  { %280 = vmatpush1.bf16.msra.mxu0 %v279_v17 }
  0xb1   :  { %271 = vmatmul.mubr.msk.f32.vlgmr.msra.gmra.mrb[0].mxu0 %vm170_vm0, %v163_v19 }
 0x184   :  { %v240_v21 = vpop.f32.mrb[0].mxu0 }
 0x185   :  { %v241_v22 = vadd.f32 %v240_v21, %v168_v20  ;;  %v242_v23 = vpop.f32.mrb[1].mxu0 }
 0x186   :  { %v243_v24 = vadd.f32 %v242_v23, %v168_v20 }
 0x188   :  { %v247_v25 = vcombine.low %v241_v22, %v243_v24 }
 0x18a   :  { %272 = vst.sshfl [vmem:[#allocation2] sm:$0x33 pattern:$0x76325410] %v247_v25 }
 0x18b   :  { %318 = shalt.err (!%p315_p4)
}
 0x18c   :  { %s319_s15 = scalar_lea.hbm %s415_s5, 64 }
 0x18d   :  { %p320_p5 = scmp.ne.s32.totalorder %s415_s5, %s319_s15  ;;  %p323_p6 = scmp.lt.u32.totalorder %s319_s15, %s415_s5 }
 0x18f   :  { %p325_p7 = pnand %p323_p6, %p320_p5 }
 0x191   :  { %328 = shalt.err (!%p325_p7)
}
 0x192   :  { %266 = dma.vmem_to_hbm [thread:$0]  %s264_s12, 64, %s415_s5, [#allocation3]  }
 0x193   :  { %329 = dma.done.wait [#allocation3], 64  }
 0x194   :  { %330 = vsyncadd [#allocation3], 4294967232 }
 0x195   :  { %270 = vsyncpa [#allocation3], 1 }

</bundles_post_ra>
